<compile_context>
chip_gen: v7x
topology: tpu7x:2x2x1
jax: 0.10.0
libtpu: 0.0.40
codegen_flags: <defaults>
</compile_context>

<pallas_src>
import functools

import jax
import jax.numpy as jnp
from jax import lax
from jax.experimental import pallas as pl
from jax.experimental.pallas import tpu as pltpu


def _default_point_tile(n):
    # Prefer 512-row tiles (multiple of 256 -> fills v6e/v7x MXU; v5e 128x128
    # already saturated).  Fall back to whole-N for tiny clouds.
    if n >= 512:
        return 512
    for cand in (256, 128, 64, 32, 16, 8):
        if n >= cand:
            return cand
    return n


def _minkloc_kernel(counts_ref, x_ref, w1_ref, b1_ref, w2_ref, b2_ref,
                    out_ref, acc_ref, *, tile_n, gem_p, gem_eps, normalize):
    """Grid = (batch, point_tiles); point axis is the trailing reduction axis.

    counts_ref : (B,)        i32  SMEM  (scalar prefetch) valid points per sample
    x_ref      : (TN, C)     f32  point-feature tile of current batch element
    w1_ref     : (C, H)      f32  backbone layer-1 weights
    b1_ref     : (1, H)      f32  backbone layer-1 bias
    w2_ref     : (H, D)      f32  backbone layer-2 weights
    b2_ref     : (1, D)      f32  backbone layer-2 bias
    out_ref    : (1, D)      f32  global descriptor of current batch element
    acc_ref    : (1, D)      f32  VMEM scratch: GeM power-sum accumulator
    """
    b = pl.program_id(0)
    t = pl.program_id(1)

    @pl.when(t == 0)
    def _():
        acc_ref[...] = jnp.zeros_like(acc_ref)

    # --- backbone: per-point MLP; bf16 MXU operands, f32 accumulation --------
    x = x_ref[...].astype(jnp.bfloat16)                      # (TN, C)
    w1 = w1_ref[...].astype(jnp.bfloat16)
    w2 = w2_ref[...].astype(jnp.bfloat16)
    h = jnp.dot(x, w1, preferred_element_type=jnp.float32)
    h = jnp.maximum(h + b1_ref[...], 0.0)                    # ReLU (f32, VPU)
    f = jnp.dot(h.astype(jnp.bfloat16), w2,
                preferred_element_type=jnp.float32)
    f = f + b2_ref[...]                                      # (TN, D)

    # --- GeM power term -------------------------------------------------------
    fc = jnp.maximum(f, gem_eps)
    if float(gem_p).is_integer() and 1 <= int(gem_p) <= 16:
        # integer power via repeated VPU multiplies (no per-element EUP traffic)
        fp = fc
        for _ in range(int(gem_p) - 1):
            fp = fp * fc
    else:
        fp = jnp.exp(gem_p * jnp.log(fc))

    # validity mask from prefetched counts (also masks any OOB tail rows)
    cnt = counts_ref[b]
    idx = t * tile_n + lax.broadcasted_iota(jnp.int32, (tile_n, 1), 0)
    fp = jnp.where(idx < cnt, fp, 0.0)

    acc_ref[...] += jnp.sum(fp, axis=0, keepdims=True)       # (1, D)

    # --- epilogue on last point tile: mean, 1/p root, optional normalize -----
    @pl.when(t == pl.num_programs(1) - 1)
    def _():
        inv_cnt = 1.0 / jnp.maximum(cnt.astype(jnp.float32), 1.0)
        m = acc_ref[...] * inv_cnt
        m = jnp.maximum(m, gem_eps ** gem_p)
        pooled = jnp.exp(jnp.log(m) * (1.0 / gem_p))          # m ** (1/p)
        if normalize:
            ssq = jnp.sum(pooled * pooled, axis=1, keepdims=True)
            pooled = pooled * lax.rsqrt(jnp.maximum(ssq, 1e-24))
        out_ref[...] = pooled.astype(out_ref.dtype)


def minkloc_forward(features, w1, b1, w2, b2, *, counts=None,
                    normalize_embeddings=False, gem_p=3.0, gem_eps=1e-6,
                    point_tile=None):
    """features: (B, N, C_in) f32; counts: optional (B,) valid points per sample.

    Returns {'global': (B, D)} like MinkLoc.forward.
    """
    B, N, C_in = features.shape
    H = w1.shape[1]
    D = w2.shape[1]
    assert w1.shape == (C_in, H) and b1.shape == (1, H)
    assert w2.shape == (H, D) and b2.shape == (1, D)

    if counts is None:
        counts = jnp.full((B,), N, dtype=jnp.int32)
    counts = jnp.clip(counts.astype(jnp.int32), 0, N)

    tn = point_tile if point_tile is not None else _default_point_tile(N)
    assert tn == N or tn % 8 == 0, "point tile must be a multiple of 8 or == N"
    n_tiles = pl.cdiv(N, tn)

    kernel = functools.partial(_minkloc_kernel, tile_n=tn, gem_p=gem_p,
                               gem_eps=gem_eps, normalize=normalize_embeddings)

    out = pl.pallas_call(
        kernel,
        out_shape=jax.ShapeDtypeStruct((B, 1, D), jnp.float32),
        grid_spec=pltpu.PrefetchScalarGridSpec(
            num_scalar_prefetch=1,
            grid=(B, n_tiles),
            in_specs=[
                # per-batch point tiles, streamed (double-buffered) over t
                pl.BlockSpec((None, tn, C_in), lambda b, t, cnt: (b, t, 0)),
                # grid-invariant weights/biases: fetched once, kept resident
                pl.BlockSpec((C_in, H), lambda b, t, cnt: (0, 0)),
                pl.BlockSpec((1, H), lambda b, t, cnt: (0, 0)),
                pl.BlockSpec((H, D), lambda b, t, cnt: (0, 0)),
                pl.BlockSpec((1, D), lambda b, t, cnt: (0, 0)),
            ],
            out_specs=pl.BlockSpec((None, 1, D), lambda b, t, cnt: (b, 0, 0)),
            scratch_shapes=[pltpu.VMEM((1, D), jnp.float32)],
        ),
        compiler_params=pltpu.CompilerParams(
            dimension_semantics=("parallel", "arbitrary")),
    )(counts, features, w1, b1, w2, b2)

    x = out.reshape(B, D)
    # asserts from the PyTorch module
    assert x.ndim == 2
    assert x.shape[1] == D
    return {"global": x}


if __name__ == "__main__":
    # Small, deterministic shapes consistent with the module:
    #   B=2 batch elements, N=64 points per element, C_in=32 input channels,
    #   hidden=64, pooling.in_dim == pooling.output_dim == D=256.
    B, N, C_IN, HID, D = 2, 64, 32, 64, 256

    key = jax.random.PRNGKey(0)
    k_feat, k_w1, k_b1, k_w2, k_b2 = jax.random.split(key, 5)

    features = jax.random.normal(k_feat, (B, N, C_IN), dtype=jnp.float32)
    w1 = jax.random.normal(k_w1, (C_IN, HID), dtype=jnp.float32) * (1.0 / jnp.sqrt(C_IN))
    b1 = jax.random.normal(k_b1, (1, HID), dtype=jnp.float32) * 0.01
    w2 = jax.random.normal(k_w2, (HID, D), dtype=jnp.float32) * (1.0 / jnp.sqrt(HID))
    b2 = jax.random.normal(k_b2, (1, D), dtype=jnp.float32) * 0.01
    # variable number of valid points per sample (pooling over true counts)
    counts = jnp.array([N, N - 16], dtype=jnp.int32)

    # TODO(synk): MinkowskiEngine sparse voxel convolutions (ME.SparseTensor
    # backbone), LocalFeatureTransformer, SpatialAttGate and the FTU branch
    # (all disabled by default in MinkLoc.__init__) are not translated; the
    # backbone is realized as its dense per-point MLP analogue.

    def ref_forward(features, w1, b1, w2, b2, counts, normalize,
                    p=3.0, eps=1e-6):
        h = jnp.einsum("bnc,ch->bnh", features.astype(jnp.bfloat16),
                       w1.astype(jnp.bfloat16),
                       preferred_element_type=jnp.float32) + b1
        h = jnp.maximum(h, 0.0)
        f = jnp.einsum("bnh,hd->bnd", h.astype(jnp.bfloat16),
                       w2.astype(jnp.bfloat16),
                       preferred_element_type=jnp.float32) + b2
        fc = jnp.maximum(f, eps)
        fp = fc * fc * fc
        mask = (jnp.arange(features.shape[1])[None, :, None]
                < counts[:, None, None]).astype(jnp.float32)
        m = (jnp.sum(fp * mask, axis=1)
             / jnp.maximum(counts[:, None].astype(jnp.float32), 1.0))
        pooled = jnp.maximum(m, eps ** 3) ** (1.0 / p)
        if normalize:
            pooled = pooled / jnp.maximum(
                jnp.linalg.norm(pooled, axis=1, keepdims=True), 1e-12)
        return pooled

    # point_tile=32 -> 2 point tiles per batch element, exercising the
    # accumulator / epilogue path of the reduction axis.
    out = minkloc_forward(features, w1, b1, w2, b2, counts=counts,
                          normalize_embeddings=False,  # module default
                          point_tile=32)
    jax.block_until_ready(out["global"])
    assert out["global"].shape == (B, D)
    assert bool(jnp.all(jnp.isfinite(out["global"])))
    ref = ref_forward(features, w1, b1, w2, b2, counts, False)
    assert bool(jnp.allclose(out["global"], ref, rtol=3e-2, atol=1e-3))

    # also exercise the normalize_embeddings=True path and default tiling
    out_n = minkloc_forward(features, w1, b1, w2, b2, counts=counts,
                            normalize_embeddings=True)
    jax.block_until_ready(out_n["global"])
    norms = jnp.linalg.norm(out_n["global"], axis=1)
    assert bool(jnp.all(jnp.abs(norms - 1.0) < 1e-4))
    ref_n = ref_forward(features, w1, b1, w2, b2, counts, True)
    assert bool(jnp.allclose(out_n["global"], ref_n, rtol=3e-2, atol=1e-3))

    print("KERNEL_OK")
</pallas_src>

<mosaic_0001>
module attributes {stable_mosaic.version = 11 : i64} {
  func.func @_minkloc_kernel(%arg0: i32, %arg1: i32, %arg2: memref<2xi32, #tpu.memory_space<smem>>, %arg3: memref<1x32x32xf32, #tpu.memory_space<vmem>>, %arg4: memref<32x64xf32, #tpu.memory_space<vmem>>, %arg5: memref<1x64xf32, #tpu.memory_space<vmem>>, %arg6: memref<64x256xf32, #tpu.memory_space<vmem>>, %arg7: memref<1x256xf32, #tpu.memory_space<vmem>>, %arg8: memref<1x1x256xf32, #tpu.memory_space<vmem>>, %arg9: memref<1x256xf32, #tpu.memory_space<vmem>>) attributes {dimension_semantics = [#tpu.dimension_semantics<parallel>, #tpu.dimension_semantics<arbitrary>], iteration_bounds = array<i64: 2, 2>, scalar_prefetch = 1 : i64, scratch_operands = 1 : i64, tpu.core_type = #tpu.core_type<tc>, window_params = [{transform_indices = @transform_0, window_bounds = array<i64: 1, 32, 32>}, {pipeline_mode = #tpu.pipeline_mode<synchronous>, transform_indices = @transform_1, window_bounds = array<i64: 32, 64>}, {pipeline_mode = #tpu.pipeline_mode<synchronous>, transform_indices = @transform_2, window_bounds = array<i64: 1, 64>}, {pipeline_mode = #tpu.pipeline_mode<synchronous>, transform_indices = @transform_3, window_bounds = array<i64: 64, 256>}, {pipeline_mode = #tpu.pipeline_mode<synchronous>, transform_indices = @transform_4, window_bounds = array<i64: 1, 256>}, {transform_indices = @transform_5, window_bounds = array<i64: 1, 1, 256>}]} {
    %c0_i32 = arith.constant 0 : i32
    %0 = arith.cmpi eq, %arg1, %c0_i32 : i32
    %1 = arith.extui %0 : i1 to i32
    %c0_i32_0 = arith.constant 0 : i32
    %2 = arith.cmpi ne, %1, %c0_i32_0 : i32
    scf.if %2 {
      %cst_21 = arith.constant 0.000000e+00 : f32
      %45 = vector.broadcast %cst_21 : f32 to vector<1x256xf32>
      %c0_22 = arith.constant 0 : index
      %c0_23 = arith.constant 0 : index
      %46 = vector.load %arg9[%c0_22, %c0_23] : memref<1x256xf32, #tpu.memory_space<vmem>>, vector<1x256xf32>
      tpu.vector_store %arg9[%c0_22, %c0_23], %45 {strides = array<i32>} : memref<1x256xf32, #tpu.memory_space<vmem>>, vector<1x256xf32>,
    } else {
    }
    %c0 = arith.constant 0 : index
    %c0_1 = arith.constant 0 : index
    %c0_2 = arith.constant 0 : index
    %3 = vector.load %arg3[%c0, %c0_1, %c0_2] : memref<1x32x32xf32, #tpu.memory_space<vmem>>, vector<1x32x32xf32>
    %4 = vector.shape_cast %3 : vector<1x32x32xf32> to vector<32x32xf32>
    %5 = arith.truncf %4 : vector<32x32xf32> to vector<32x32xbf16>
    %c0_3 = arith.constant 0 : index
    %c0_4 = arith.constant 0 : index
    %6 = vector.load %arg4[%c0_3, %c0_4] : memref<32x64xf32, #tpu.memory_space<vmem>>, vector<32x64xf32>
    %7 = arith.truncf %6 : vector<32x64xf32> to vector<32x64xbf16>
    %c0_5 = arith.constant 0 : index
    %c0_6 = arith.constant 0 : index
    %8 = vector.load %arg6[%c0_5, %c0_6] : memref<64x256xf32, #tpu.memory_space<vmem>>, vector<64x256xf32>
    %9 = arith.truncf %8 : vector<64x256xf32> to vector<64x256xbf16>
    %cst = arith.constant dense<0.000000e+00> : vector<32x64xf32>
    %10 = tpu.matmul %5, %7, %cst {dimension_numbers = #tpu.dot_dimension_numbers<[1], [0], [0], [1], [0, 0, 1, 1], [], []>} : vector<32x32xbf16>, vector<32x64xbf16>, vector<32x64xf32> -> vector<32x64xf32>
    %c0_7 = arith.constant 0 : index
    %c0_8 = arith.constant 0 : index
    %11 = vector.load %arg5[%c0_7, %c0_8] : memref<1x64xf32, #tpu.memory_space<vmem>>, vector<1x64xf32>
    %12 = vector.broadcast %11 : vector<1x64xf32> to vector<32x64xf32>
    %13 = arith.addf %10, %12 : vector<32x64xf32>
    %cst_9 = arith.constant 0.000000e+00 : f32
    %14 = vector.broadcast %cst_9 : f32 to vector<32x64xf32>
    %15 = arith.maximumf %13, %14 : vector<32x64xf32>
    %16 = arith.truncf %15 : vector<32x64xf32> to vector<32x64xbf16>
    %cst_10 = arith.constant dense<0.000000e+00> : vector<32x256xf32>
    %17 = tpu.matmul %16, %9, %cst_10 {dimension_numbers = #tpu.dot_dimension_numbers<[1], [0], [0], [1], [0, 0, 1, 1], [], []>} : vector<32x64xbf16>, vector<64x256xbf16>, vector<32x256xf32> -> vector<32x256xf32>
    %c0_11 = arith.constant 0 : index
    %c0_12 = arith.constant 0 : index
    %18 = vector.load %arg7[%c0_11, %c0_12] : memref<1x256xf32, #tpu.memory_space<vmem>>, vector<1x256xf32>
    %19 = vector.broadcast %18 : vector<1x256xf32> to vector<32x256xf32>
    %20 = arith.addf %17, %19 : vector<32x256xf32>
    %cst_13 = arith.constant 9.99999997E-7 : f32
    %21 = vector.broadcast %cst_13 : f32 to vector<32x256xf32>
    %22 = arith.maximumf %20, %21 : vector<32x256xf32>
    %23 = arith.mulf %22, %22 : vector<32x256xf32>
    %24 = arith.mulf %23, %22 : vector<32x256xf32>
    %25 = arith.index_cast %arg0 : i32 to index
    %26 = memref.load %arg2[%25] : memref<2xi32, #tpu.memory_space<smem>>
    %c32_i32 = arith.constant 32 : i32
    %27 = arith.muli %arg1, %c32_i32 : i32
    %28 = tpu.iota {dimensions = array<i32: 0>} : vector<32x1xi32>
    %29 = vector.broadcast %27 : i32 to vector<32x1xi32>
    %30 = arith.addi %29, %28 : vector<32x1xi32>
    %31 = vector.broadcast %26 : i32 to vector<32x1xi32>
    %32 = arith.cmpi slt, %30, %31 : vector<32x1xi32>
    %cst_14 = arith.constant 0.000000e+00 : f32
    %33 = vector.shape_cast %32 : vector<32x1xi1> to vector<32x1xi1>
    %34 = vector.broadcast %33 : vector<32x1xi1> to vector<32x256xi1>
    %35 = vector.broadcast %cst_14 : f32 to vector<32x256xf32>
    %36 = arith.select %34, %24, %35 : vector<32x256xi1>, vector<32x256xf32>
    %c0_15 = arith.constant 0 : index
    %c0_16 = arith.constant 0 : index
    %37 = vector.load %arg9[%c0_15, %c0_16] : memref<1x256xf32, #tpu.memory_space<vmem>>, vector<1x256xf32>
    %cst_17 = arith.constant dense<0.000000e+00> : vector<256xf32>
    %38 = vector.multi_reduction <add>, %36, %cst_17 [0] : vector<32x256xf32> to vector<256xf32>
    %39 = vector.shape_cast %38 : vector<256xf32> to vector<1x256xf32>
    %40 = arith.addf %37, %39 : vector<1x256xf32>
    %c0_18 = arith.constant 0 : index
    %c0_19 = arith.constant 0 : index
    %41 = vector.load %arg9[%c0_18, %c0_19] : memref<1x256xf32, #tpu.memory_space<vmem>>, vector<1x256xf32>
    tpu.vector_store %arg9[%c0_18, %c0_19], %40 {strides = array<i32>} : memref<1x256xf32, #tpu.memory_space<vmem>>, vector<1x256xf32>,
    %c1_i32 = arith.constant 1 : i32
    %42 = arith.cmpi eq, %arg1, %c1_i32 : i32
    %43 = arith.extui %42 : i1 to i32
    %c0_i32_20 = arith.constant 0 : i32
    %44 = arith.cmpi ne, %43, %c0_i32_20 : i32
    scf.if %44 {
      %45 = arith.sitofp %26 : i32 to f32
      %cst_21 = arith.constant 1.000000e+00 : f32
      %46 = arith.maximumf %45, %cst_21 : f32
      %cst_22 = arith.constant 1.000000e+00 : f32
      %47 = arith.divf %cst_22, %46 : f32
      %c0_23 = arith.constant 0 : index
      %c0_24 = arith.constant 0 : index
      %48 = vector.load %arg9[%c0_23, %c0_24] : memref<1x256xf32, #tpu.memory_space<vmem>>, vector<1x256xf32>
      %49 = vector.broadcast %47 : f32 to vector<1x256xf32>
      %50 = arith.mulf %48, %49 : vector<1x256xf32>
      %cst_25 = arith.constant 1.000000e-18 : f32
      %51 = vector.broadcast %cst_25 : f32 to vector<1x256xf32>
      %52 = arith.maximumf %50, %51 : vector<1x256xf32>
      %53 = math.log %52 : vector<1x256xf32>
      %cst_26 = arith.constant 0.333333343 : f32
      %54 = vector.broadcast %cst_26 : f32 to vector<1x256xf32>
      %55 = arith.mulf %53, %54 : vector<1x256xf32>
      %56 = math.exp %55 : vector<1x256xf32>
      %c0_27 = arith.constant 0 : index
      %c0_28 = arith.constant 0 : index
      %c0_29 = arith.constant 0 : index
      %57 = vector.load %arg8[%c0_27, %c0_28, %c0_29] : memref<1x1x256xf32, #tpu.memory_space<vmem>>, vector<1x1x256xf32>
      %58 = vector.shape_cast %57 : vector<1x1x256xf32> to vector<1x256xf32>
      %59 = vector.shape_cast %56 : vector<1x256xf32> to vector<1x1x256xf32>
      tpu.vector_store %arg8[%c0_27, %c0_28, %c0_29], %59 {strides = array<i32>} : memref<1x1x256xf32, #tpu.memory_space<vmem>>, vector<1x1x256xf32>,
    } else {
    }
    return
  }
  func.func @transform_0(%arg0: i32, %arg1: i32, %arg2: memref<2xi32, #tpu.memory_space<smem>>) -> (i32, i32, i32) {
    %c0_i32 = arith.constant 0 : i32
    %c0_i32_0 = arith.constant 0 : i32
    return %arg0, %arg1, %c0_i32 : i32, i32, i32
  }
  func.func @transform_1(%arg0: i32, %arg1: i32, %arg2: memref<2xi32, #tpu.memory_space<smem>>) -> (i32, i32) {
    %c0_i32 = arith.constant 0 : i32
    %c0_i32_0 = arith.constant 0 : i32
    %c0_i32_1 = arith.constant 0 : i32
    return %c0_i32, %c0_i32_0 : i32, i32
  }
  func.func @transform_2(%arg0: i32, %arg1: i32, %arg2: memref<2xi32, #tpu.memory_space<smem>>) -> (i32, i32) {
    %c0_i32 = arith.constant 0 : i32
    %c0_i32_0 = arith.constant 0 : i32
    %c0_i32_1 = arith.constant 0 : i32
    return %c0_i32, %c0_i32_0 : i32, i32
  }
  func.func @transform_3(%arg0: i32, %arg1: i32, %arg2: memref<2xi32, #tpu.memory_space<smem>>) -> (i32, i32) {
    %c0_i32 = arith.constant 0 : i32
    %c0_i32_0 = arith.constant 0 : i32
    %c0_i32_1 = arith.constant 0 : i32
    return %c0_i32, %c0_i32_0 : i32, i32
  }
  func.func @transform_4(%arg0: i32, %arg1: i32, %arg2: memref<2xi32, #tpu.memory_space<smem>>) -> (i32, i32) {
    %c0_i32 = arith.constant 0 : i32
    %c0_i32_0 = arith.constant 0 : i32
    %c0_i32_1 = arith.constant 0 : i32
    return %c0_i32, %c0_i32_0 : i32, i32
  }
  func.func @transform_5(%arg0: i32, %arg1: i32, %arg2: memref<2xi32, #tpu.memory_space<smem>>) -> (i32, i32, i32) {
    %c0_i32 = arith.constant 0 : i32
    %c0_i32_0 = arith.constant 0 : i32
    %c0_i32_1 = arith.constant 0 : i32
    return %arg0, %c0_i32, %c0_i32_0 : i32, i32, i32
  }
}

</mosaic_0001>

<bundles_post_ra>
// kernel: tpu_custom_call.1
= control target key start
LH: loop header
LB: loop body
LE: loop exit
PB: predicated region body
PF: predicated region fallthrough
CT: control target
= control target key end

     0   :  { %s1163_s0 = inlined_call_operand.vmem [shape: s32[2], index: 0, kind: input, shape index: {}]   ;;  %s1164_s1 = inlined_call_operand.vmem [shape: f32[2,64,32], index: 1, kind: input, shape index: {}]   ;;  %s1165_s2 = inlined_call_operand.vmem [shape: f32[32,64], index: 2, kind: input, shape index: {}]   ;;  %s1166_s3 = inlined_call_operand.vmem [shape: f32[1,64], index: 3, kind: input, shape index: {}]   ;;  %s1167_s4 = inlined_call_operand.vmem [shape: f32[64,256], index: 4, kind: input, shape index: {}]   ;;  %s1168_s5 = inlined_call_operand.vmem [shape: f32[1,256], index: 5, kind: input, shape index: {}]   ;;  %s1169_s6 = inlined_call_operand.hbm [shape: f32[2,1,256], index: 6, kind: output, shape index: {}]  }
   0x1   :  { %s11_s23 = sshll.u32 %s1163_s0, 4  ;;  %s12_s23 = int_to_ptr.vmem [resolvable:$true] %s11_s23 }
   0x2   :  { %s774_s24 = scalar_lea.vmem %s12_s23, 16  ;;  %p779_p1 = scmp.lt.s32.totalorder %s12_s23, %s12_s23 }
   0x3   :  { %p775_p0 = scmp.ne.s32.totalorder %s12_s23, %s774_s24  ;;  %p780_p2 = scmp.lt.s32.totalorder %s774_s24, %s774_s24 }
   0x5   :  { %p781_p3 = por %p780_p2, %p779_p1 }
   0x7   :  { %p782_p4 = pnand %p781_p3, %p775_p0 }
   0x9   :  { %785 = shalt.err (!%p782_p4)  }
   0xa   :  { %s884_s25 = smov [#allocation4]  }
   0xb   :  { %14 = dma.vmem_to_smem %s12_s23, 16, %s884_s25, [#allocation3] }
   0xc   :  { %846 = dma.done.wait [#allocation3], 16 }
   0xd   :  { %847 = vsyncadd [#allocation3], 4294967280 }
   0xe   :  { %16 = sfence }
   0xf   :  { %17 = vsyncpa [#allocation6], 0 }
  0x10   :  { %19 = vsyncpa [#allocation6 + $0x1], 0  ;;  %s928_s26 = smov 0   ;;  %s930_s27 = smov 0  }
  0x11   :  { %s932_s0 = smov 0   ;;  %s934_s28 = smov 0  }
  0x12   :  { %s936_s29 = smov 0   ;;  %s938_s30 = smov 0  }
  0x13   :  { %s940_s7 = smov 0   ;;  %s942_s8 = smov 0  }
  0x14 LB: > { %s655_s9 = sadd.s32 4294967295, %s882_s8   ;;  %s656_s10 = sadd.s32 4294967294, %s882_s8   ;;  %s882_s8 = sphi %s942_s8, %s25_s8   ;;  %s878_s7 = sphi %s940_s7, %s1182_s7   ;;  %s874_s30 = sphi %s938_s30, %s1181_s30   ;;  %s870_s29 = sphi %s936_s29, %s1180_s29   ;;  %s866_s28 = sphi %s934_s28, %s1179_s28   ;;  %s862_s0 = sphi %s932_s0, %s1178_s0   ;;  %s858_s27 = sphi %s930_s27, %s1177_s27   ;;  %s854_s26 = sphi %s928_s26, %s1176_s26  }
  0x15   : > { %s34_s11 = sadd.s32 1, %s874_s30  ;;  %s37_s12 = sadd.s32 1, %s878_s7 }
  0x16   : > { %p35_p5 = scmp.ge.s32.totalorder %s34_s11, 2  ;;  %p166_p6 = scmp.ne.s32.totalorder %s862_s0, %s858_s27 }
  0x17   : > { %p167_p7 = scmp.eq.s32.totalorder %s655_s9, 3  ;;  %p172_p9 = scmp.ne.s32.totalorder %s858_s27, %s854_s26 }
  0x18   : > { %s1184_s11 = smov (%p35_p5, %s34_s11), 0  ;;  %s1186_s12 = smov (!%p35_p5, %s37_s12), %s878_s7 }
  0x19   : > { %p977_p8 = por %p167_p7, %p166_p6  ;;  %p39_p10 = scmp.ge.s32.totalorder %s1186_s12, 2 }
  0x1a   : > { %p173_p11 = scmp.eq.s32.totalorder %s656_s10, 3  ;;  %p659_p12 = scmp.ge.s32.totalorder %s882_s8, 1 }
  0x1b   : > { %p216_p13 = scmp.lt.s32.totalorder %s882_s8, 5  ;;  %s1188_s12 = smov (%p39_p10, %s1186_s12), 0 }
  0x1c   : > { %p987_p0 = por %p173_p11, %p172_p9  ;;  %s153_s15 = ssub.s32 %s878_s7, %s1188_s12 }
  0x1d   : > { %p217_p1 = pnand %p659_p12, %p216_p13  ;;  %s156_s16 = sadd.s32 1, %s862_s0 }
  0x1e   : > { %p154_p2 = scmp.eq.s32.totalorder %s153_s15, 0  ;;  %s1170_s18 = sand.u32 (!%p217_p1), 1, %s858_s27  }
  0x1f   : > { %220 = sbr.rel (%p217_p1) target bundleno = 620 (0x26c), region = 40  ;;  %s661_s19 = sshll.u32 (!%p217_p1), %s866_s28, 2 }
  0x20   : > { %s995_s17 = scalar_select %p154_p2, %s862_s0, %s156_s16  }
  0x21   : > { %s1001_s20 = sshll.u32 (!%p217_p1), %s1170_s18, 1  ;;  %p249_p3 = scmp.lt.s32.totalorder (!%p217_p1), %s870_s29, 1 }
  0x22   : > { %p251_p4 = scmp.lt.s32.totalorder (!%p217_p1), %s661_s19, 7  ;;  %s247_s15 = scalar_lea.vmem (!%p217_p1), [#allocation5], %s1001_s20 }
  0x23   : > { %p664_p5 = scmp.ne.s32.totalorder (!%p217_p1), %s866_s28, 0 }
  0x26   : > { %s250_s21 = scalar_select %p249_p3, %s870_s29, 1 }
  0x27   : > { %s1190_s19 = smov (!%p251_p4, %s661_s19), 7  ;;  %262 = sbr.rel (%p664_p5) target bundleno = 46 (0x2e), region = 44 }
  0x28   : > { %s662_s22 = sshll.u32 %s250_s21, 3  ;;  %v263_v0 = vlaneseq (!%p664_p5)  ;;  %v885_v1 = vmov (!%p664_p5), 0.0  }
  0x29   : > { %s254_s23 = sadd.s32 %s662_s22, %s1190_s19 }
  0x2a   : > { %s663_s24 = sshll.u32 %s254_s23, 3  ;;  %vm265_vm0 = vcmp.lt.s32.totalorder (!%p664_p5), %v263_v0, 256 }
  0x2b   : > { %s256_s10 = scalar_lea.vmem %s1164_s1, %s663_s24  ;;  %267 = vst.msk [vmem:[#allocation2] sm:$0x3] (!%p664_p5), %vm265_vm0, %v885_v1 }
  0x2e PF: > { %v274_v2 = vld [vmem:[%s1165_s2] sm:$0xff]  ;;  %v275_v3 = vld [vmem:[%s1165_s2 + $0x8] sm:$0xff]  ;;  %v276_v4 = vld [vmem:[%s1165_s2 + $0x10] sm:$0xff]  ;;  %vm311_vm1 = vcmask 261120   ;;  %v886_v38 = vmov 0   ;;  %vm385_vm2 = vcmask 523264   ;;  %v375_v54 = vlaneseq }
  0x2f   : > { %v278_v5 = vpack.c.bf16 %v275_v3, %v274_v2  ;;  %v277_v6 = vld [vmem:[%s1165_s2 + $0x18] sm:$0xff]  ;;  %v268_v7 = vld [vmem:[%s256_s10] sm:$0xff]  ;;  %v269_v8 = vld [vmem:[%s256_s10 + $0x8] sm:$0xff]  ;;  %424 = vmatprep.mubr.bf16.mxu1 %v886_v38  ;;  %s1084_s23 = sld [smem:[#allocation4 + %s870_s29]]  ;;  %s670_s24 = sshll.u32 %s866_s28, 5 }
  0x30   : > { %v279_v9 = vpack.c.bf16 %v277_v6, %v276_v4  ;;  %v272_v10 = vpack.c.bf16 %v269_v8, %v268_v7  ;;  %v270_v11 = vld [vmem:[%s256_s10 + $0x10] sm:$0xff]  ;;  %v271_v12 = vld [vmem:[%s256_s10 + $0x18] sm:$0xff]  ;;  %v281_v13 = vld [vmem:[%s1167_s4 + $0x8] sm:$0xff]  ;;  %v1076_v55 = vshrl.u32 %v375_v54, 7  ;;  %v476_v62 = vstv %s670_s24  ;;  %p671_p6 = scmp.ne.s32.totalorder %s866_s28, 1 }
  0x31   : > { %682 = vmatprep.subr.bf16.mxu0 %v278_v5  ;;  %v283_v14 = vld [vmem:[%s1167_s4 + $0x18] sm:$0xff]  ;;  %v280_v15 = vld [vmem:[%s1167_s4] sm:$0xff]  ;;  %v282_v16 = vld [vmem:[%s1167_s4 + $0x10] sm:$0xff]  ;;  %v273_v24 = vpack.c.bf16 %v271_v12, %v270_v11  ;;  %vm1096_vm7 = vcmp.lt.s32.totalorder %v375_v54, 256  ;;  %s888_s25 = smov (!%p671_p6), 1.0  }
  0x32   : > { %683 = vmatpush3.bf16.msra.mxu0 %v278_v5  ;;  %686 = vmatprep.mubr.msk.bf16.mxu0 %vm311_vm1, %v272_v10  ;;  %v297_v17 = vpack.c.bf16 %v283_v14, %v281_v13  ;;  %v296_v18 = vpack.c.bf16 %v282_v16, %v280_v15  ;;  %v285_v19 = vld [vmem:[%s1167_s4 + $0x28] sm:$0xff]  ;;  %v287_v20 = vld [vmem:[%s1167_s4 + $0x38] sm:$0xff]  ;;  %v284_v21 = vld [vmem:[%s1167_s4 + $0x20] sm:$0xff]  ;;  %v377_v56 = vsub.s32 0, %v1076_v55  ;;  %v381_v58 = vsub.s32 1, %v1076_v55 }
  0x33   : > { %684 = vmatprep.subr.bf16.mxu0 %v279_v9  ;;  %v299_v22 = vpack.c.bf16 %v287_v20, %v285_v19  ;;  %v286_v23 = vld [vmem:[%s1167_s4 + $0x30] sm:$0xff]  ;;  %v289_v26 = vld [vmem:[%s1167_s4 + $0x48] sm:$0xff]  ;;  %v291_v27 = vld [vmem:[%s1167_s4 + $0x58] sm:$0xff]  ;;  %v473_v63 = vadd.s32 8, %v1076_v55  ;;  %v477_v5 = vadd.s32 %v476_v62, %v1076_v55  ;;  %v474_v14 = vadd.s32 16, %v1076_v55 }
  0x34   : > { %392 = vmatprep.subr.bf16.mxu1 %v297_v17  ;;  %v298_v25 = vpack.c.bf16 %v286_v23, %v284_v21  ;;  %v301_v28 = vpack.c.bf16 %v291_v27, %v289_v26  ;;  %v288_v29 = vld [vmem:[%s1167_s4 + $0x40] sm:$0xff]  ;;  %v290_v30 = vld [vmem:[%s1167_s4 + $0x50] sm:$0xff]  ;;  %v293_v32 = vld [vmem:[%s1167_s4 + $0x68] sm:$0xff]  ;;  %v475_v17 = vadd.s32 24, %v1076_v55 }
  0x35   : > { %393 = vmatpush1.bf16.msra.mxu1 %v296_v18  ;;  %v300_v31 = vpack.c.bf16 %v290_v30, %v288_v29  ;;  %v295_v33 = vld [vmem:[%s1167_s4 + $0x78] sm:$0xff]  ;;  %v292_v35 = vld [vmem:[%s1167_s4 + $0x60] sm:$0xff]  ;;  %v294_v36 = vld [vmem:[%s1167_s4 + $0x70] sm:$0xff]  ;;  %v481_v8 = vstv %s1084_s23  ;;  %v478_v10 = vadd.s32 %v476_v62, %v473_v63  ;;  %s549_s10 = scvt.s32.f32 (!%p671_p6), %s1084_s23 }
  0x36   : > { %685 = vmatpush3.bf16.msra.mxu0 %v279_v9  ;;  %394 = vmatprep.subr.bf16.mxu1 %v299_v22  ;;  %v303_v34 = vpack.c.bf16 %v295_v33, %v293_v32  ;;  %v302_v37 = vpack.c.bf16 %v294_v36, %v292_v35  ;;  %v665_v39 = vld [vmem:[%s1166_s3] ss:$0 sm:$0xff]  ;;  %vm482_vm3 = vcmp.lt.s32.totalorder %v477_v5, %v481_v8 }
  0x37   : > { %v373_v57 = vld [vmem:[%s1168_s5] sm:$0x3]  ;;  %vm483_vm4 = vcmp.lt.s32.totalorder %v478_v10, %v481_v8  ;;  %s550_s18 = smax.f32 (!%p671_p6), %s888_s25, %s549_s10 }
  0x38   : > { %v378_v59 = vrot.slane %v373_v57, %v377_v56  ;;  %v382_v60 = vrot.slane %v373_v57, %v381_v58 }
  0x39   : > { %687 = vmatmul.mubr.msk.bf16.vlgmr.msra.gmra.mrb[0].mxu0 %vm311_vm1, %v273_v24  ;;  %395 = vmatpush1.bf16.msra.mxu1 %v298_v25  ;;  %v479_v25 = vadd.s32 %v476_v62, %v474_v14 }
  0x3a   : > { %396 = vmatprep.subr.bf16.mxu1 %v301_v28 }
  0x3b   : > { %vm484_vm5 = vcmp.lt.s32.totalorder %v479_v25, %v481_v8 }
  0x3d   : > { %397 = vmatpush1.bf16.msra.mxu1 %v300_v31  ;;  %v480_v31 = vadd.s32 %v476_v62, %v475_v17 }
  0x3e   : > { %398 = vmatprep.subr.bf16.mxu1 %v303_v34 }
  0x3f   : > { %vm485_vm6 = vcmp.lt.s32.totalorder %v480_v31, %v481_v8 }
  0x41   : > { %399 = vmatpush1.bf16.msra.mxu1 %v302_v37 }
 0x10c   : > { %v688_v40 = vpop.f32.mrb[0].mxu0 }
 0x10d   : > { %v361_v41 = vadd.f32 %v688_v40, %v665_v39  ;;  %v352_v42 = vpop.f32.mrb[1].mxu0 }
 0x10e   : > { %v353_v43 = vadd.f32 %v665_v39, %v352_v42  ;;  %v689_v44 = vpop.f32.mrb[2].mxu0 }
 0x10f   : > { %v364_v45 = vadd.f32 %v689_v44, %v665_v39  ;;  %v355_v46 = vpop.f32.mrb[3].mxu0  ;;  %v369_v48 = vmax.f32 %v361_v41, 0.0 }
 0x110   : > { %v356_v47 = vadd.f32 %v665_v39, %v355_v46  ;;  %v367_v50 = vmax.f32 %v353_v43, 0.0 }
 0x111   : > { %v370_v49 = vmax.f32 %v364_v45, 0.0 }
 0x112   : > { %v368_v51 = vmax.f32 %v356_v47, 0.0 }
 0x113   : > { %v372_v52 = vpack.c.bf16 %v370_v49, %v369_v48 }
 0x114   : > { %v371_v53 = vpack.c.bf16 %v368_v51, %v367_v50 }
 0x116   : > { %668 = vmatmul.mubr.msk.bf16.vlgmr.msra.gmra.mrb[0].mxu1 %vm385_vm2, %v371_v53 }
 0x117   : > { %434 = vmatprep.mubr.bf16.mxu1 %v886_v38 }
 0x11e   : > { %669 = vmatmul.mubr.msk.bf16.gmra.mrb[4].mxu1 %vm385_vm2, %v372_v52 }
 0x1e9   : > { %v426_v61 = vpop.f32.mrb[0].mxu1 }
 0x1ea   : > { %v427_v0 = vadd.f32 %v426_v61, %v378_v59  ;;  %v428_v1 = vpop.f32.mrb[1].mxu1 }
 0x1eb   : > { %v429_v2 = vadd.f32 %v428_v1, %v382_v60  ;;  %v430_v3 = vpop.f32.mrb[2].mxu1 }
 0x1ec   : > { %v445_v4 = vmax.f32 %v427_v0, 1e-06  ;;  %v431_v6 = vadd.f32 %v430_v3, %v378_v59  ;;  %v432_v7 = vpop.f32.mrb[3].mxu1 }
 0x1ed   : > { %v446_v9 = vmax.f32 %v429_v2, 1e-06  ;;  %v433_v11 = vadd.f32 %v432_v7, %v382_v60  ;;  %v887_v2 = vmov 1966171168  }
 0x1ee   : > { %v453_v12 = vmul.f32 %v445_v4, %v445_v4  ;;  %v447_v13 = vmax.f32 %v431_v6, 1e-06  ;;  %v525_v3 = vunpack.c.l.s4 %v887_v2 }
 0x1ef   : > { %v454_v15 = vmul.f32 %v446_v9, %v446_v9  ;;  %v448_v16 = vmax.f32 %v433_v11, 1e-06 }
 0x1f0   : > { %v461_v18 = vmul.f32 %v453_v12, %v445_v4  ;;  %v455_v19 = vmul.f32 %v447_v13, %v447_v13  ;;  %v526_v8 = vunpack.c.0.s8 %v525_v3 }
 0x1f1   : > { %v462_v20 = vmul.f32 %v454_v15, %v446_v9  ;;  %v456_v21 = vmul.f32 %v448_v16, %v448_v16  ;;  %v436_v22 = vpop.f32.mrb[4].mxu1 }
 0x1f2   : > { %v463_v23 = vmul.f32 %v455_v19, %v447_v13  ;;  %v437_v24 = vadd.f32 %v436_v22, %v378_v59  ;;  %v438_v26 = vpop.f32.mrb[5].mxu1  ;;  %v494_v27 = vsel %vm482_vm3, %v461_v18, 0.0  ;;  %v529_v13 = vsub.s32 %v526_v8, %v1076_v55 }
 0x1f3   : > { %v464_v28 = vmul.f32 %v456_v21, %v448_v16  ;;  %v439_v29 = vadd.f32 %v438_v26, %v382_v60  ;;  %v440_v30 = vpop.f32.mrb[6].mxu1  ;;  %v495_v32 = vsel %vm482_vm3, %v462_v20, 0.0  ;;  %v502_v16 = vld [vmem:[#allocation2] sm:$0x3]  ;;  %v551_v55 = vstv (!%p671_p6), %s550_s18 }
 0x1f4   : > { %v496_v33 = vsel %vm483_vm4, %v463_v23, 0.0  ;;  %v449_v34 = vmax.f32 %v437_v24, 1e-06  ;;  %v441_v35 = vadd.f32 %v440_v30, %v378_v59  ;;  %v442_v36 = vpop.f32.mrb[7].mxu1  ;;  %768 = vrcp.f32 (!%p671_p6), %v551_v55 }
 0x1f5   : > { %v503_v37 = vadd.f32 %v496_v33, %v494_v27  ;;  %v497_v38 = vsel %vm483_vm4, %v464_v28, 0.0  ;;  %v450_v39 = vmax.f32 %v439_v29, 1e-06  ;;  %v443_v40 = vadd.f32 %v442_v36, %v382_v60 }
 0x1f6   : > { %v512_v41 = vadd.f32 %v497_v38, %v495_v32  ;;  %v457_v42 = vmul.f32 %v449_v34, %v449_v34  ;;  %v451_v43 = vmax.f32 %v441_v35, 1e-06 }
 0x1f7   : > { %v458_v44 = vmul.f32 %v450_v39, %v450_v39  ;;  %v452_v45 = vmax.f32 %v443_v40, 1e-06 }
 0x1f8   : > { %v465_v46 = vmul.f32 %v457_v42, %v449_v34  ;;  %v459_v47 = vmul.f32 %v451_v43, %v451_v43 }
 0x1f9   : > { %v466_v48 = vmul.f32 %v458_v44, %v450_v39  ;;  %v460_v49 = vmul.f32 %v452_v45, %v452_v45 }
 0x1fa   : > { %v498_v50 = vsel %vm484_vm5, %v465_v46, 0.0  ;;  %v467_v51 = vmul.f32 %v459_v47, %v451_v43 }
 0x1fb   : > { %v504_v52 = vadd.f32 %v503_v37, %v498_v50  ;;  %v499_v53 = vsel %vm484_vm5, %v466_v48, 0.0  ;;  %v468_v56 = vmul.f32 %v460_v49, %v452_v45 }
 0x1fc   : > { %v513_v57 = vadd.f32 %v512_v41, %v499_v53  ;;  %v500_v58 = vsel %vm485_vm6, %v467_v51, 0.0 }
 0x1fd   : > { %v505_v59 = vadd.f32 %v504_v52, %v500_v58  ;;  %v501_v60 = vsel %vm485_vm6, %v468_v56, 0.0 }
 0x1fe   : > { %v514_v61 = vadd.f32 %v513_v57, %v501_v60  ;;  %v769_v20 = vpop.eup (!%p671_p6), %768 }
 0x1ff   : > { %v506_v62 = vrot.slane %v505_v59, 4  ;;  %690 = vpush (!%p671_p6), %v769_v20 }
 0x200   : > { %v515_v63 = vrot.slane %v514_v61, 4 }
 0x201   : > { %v507_v0 = vadd.f32 %v506_v62, %v505_v59 }
 0x202   : > { %v516_v1 = vadd.f32 %v515_v63, %v514_v61 }
 0x203   : > { %v508_v4 = vrot.slane %v507_v0, 2 }
 0x204   : > { %v517_v5 = vrot.slane %v516_v1, 2 }
 0x205   : > { %v509_v6 = vadd.f32 %v508_v4, %v507_v0 }
 0x206   : > { %v518_v7 = vadd.f32 %v517_v5, %v516_v1 }
 0x207   : > { %v510_v9 = vrot.slane %v509_v6, 1 }
 0x208   : > { %v519_v10 = vrot.slane %v518_v7, 1 }
 0x209   : > { %v511_v11 = vadd.f32 %v510_v9, %v509_v6 }
 0x20a   : > { %v520_v12 = vadd.f32 %v519_v10, %v518_v7 }
 0x20c   : > { %v523_v14 = vcombine.low %v511_v11, %v520_v12 }
 0x20e   : > { %v530_v15 = vrot.slane %v523_v14, %v529_v13  ;;  %548 = sbr.rel (%p671_p6) target bundleno = 595 (0x253), region = 48 }
 0x210   : > { %v537_v17 = vrot.slane %v530_v15, %v529_v13 }
 0x212   : > { %v539_v19 = vadd.f32 %v537_v17, %v502_v16 }
 0x214   : > { %544 = vst.msk [vmem:[#allocation2] sm:$0x3] %vm1096_vm7, %v539_v19 }
 0x21b   : > { %v554_v54 = vld [vmem:[#allocation2] sm:$0x3] }
 0x230   : > { %s691_s9 = spop %690 }
 0x231   : > { %v555_v21 = vstv %s691_s9 }
 0x232   : > { %v556_v22 = vmul.f32 %v555_v21, %v554_v54 }
 0x234   : > { %v557_v23 = vmax.f32 %v556_v22, 1e-18 }
 0x236   : > { %770 = vlog2.f32 %v557_v23 }
 0x240   : > { %v771_v24 = vpop.eup %770 }
 0x241   : > { %v559_v25 = vmul.f32 0.6931472, %v771_v24 }
 0x243   : > { %v560_v26 = vmul.f32 0.33333334, %v559_v25 }
 0x245   : > { %v561_v27 = vmul.f32 1.442695, %v560_v26 }
 0x247   : > { %772 = vpow2.f32 %v561_v27 }
 0x251   : > { %v773_v28 = vpop.eup %772 }
 0x252   : > { %563 = vst.msk [vmem:[%s247_s15] sm:$0x3] %vm1096_vm7, %v773_v28 }
 0x253 PF: > { %s677_s28 = sshll.u32 %s870_s29, 5  ;;  %s579_s22 = sshll.u32 %s247_s15, 4  ;;  %s580_s22 = int_to_ptr.vmem [resolvable:$true] %s579_s22 }
 0x254   : > { %s1112_s19 = scalar_lea.hbm %s1169_s6, %s677_s28  ;;  %s1175_s23 = sand.u32 1, %s858_s27  }
 0x255   : > { %s565_s24 = scalar_lea.sflag [#allocation6], %s1175_s23  ;;  %s786_s10 = scalar_lea.vmem %s580_s22, 32 }
 0x256   : > { %p787_p7 = scmp.ne.s32.totalorder %s580_s22, %s786_s10  ;;  %s889_s25 = smov [#allocation5]  }
 0x257   : > { %s790_s18 = sshll.u32 %s889_s25, 4  ;;  %s791_s18 = int_to_ptr.vmem [resolvable:$false] %s790_s18 }
 0x258   : > { %p788_p9 = pnand %p787_p7, %p977_p8  ;;  %s792_s9 = scalar_lea.vmem %s791_s18, 64 }
 0x259   : > { %p793_p11 = scmp.lt.s32.totalorder %s580_s22, %s791_s18  ;;  %p794_p12 = scmp.lt.s32.totalorder %s792_s9, %s786_s10 }
 0x25a   : > { %p789_p10 = pneg %p788_p9 }
 0x25b   : > { %p795_p13 = por %p794_p12, %p793_p11 }
 0x25d   : > { %p796_p1 = pnand %p795_p13, %p789_p10 }
 0x25f   : > { %799 = shalt.err (!%p796_p1)
}
 0x260   : > { %s800_s29 = scalar_lea.hbm %s1112_s19, 32  ;;  %s804_s28 = scalar_lea.hbm %s1169_s6, 64 }
 0x261   : > { %p801_p2 = scmp.ne.s32.totalorder %s1112_s19, %s800_s29  ;;  %p805_p5 = scmp.lt.u32.totalorder %s1112_s19, %s1169_s6 }
 0x262   : > { %p806_p6 = scmp.lt.u32.totalorder %s804_s28, %s800_s29  ;;  %p808_p9 = scmp.lt.u32.totalorder %s800_s29, %s1112_s19 }
 0x263   : > { %p802_p3 = pnand %p801_p2, %p977_p8 }
 0x264   : > { %p807_p7 = por %p806_p6, %p805_p5 }
 0x265   : > { %p803_p4 = pneg %p802_p3 }
 0x266   : > { %p809_p10 = por %p808_p9, %p807_p7 }
 0x268   : > { %p810_p11 = pnand %p809_p10, %p803_p4 }
 0x26a   : > { %813 = shalt.err (!%p810_p11)
}
 0x26b   : > { %692 = dma.vmem_to_hbm [thread:$0]  (%p977_p8), %s580_s22, 32, %s1112_s19, %s565_s24  }
 0x26c PF: > { %p698_p12 = scmp.ge.s32.totalorder %s882_s8, 2  ;;  %s591_s23 = sand.u32 1, %s854_s26  }
 0x26d   : > { %s592_s10 = scalar_lea.sflag [#allocation6], %s591_s23 }
 0x26e   : > { %p695_p13 = pnand %p698_p12, %p987_p0 }
 0x270   : > { %849 = dma.done.wait (!%p695_p13), %s592_s10, 32  }
 0x271   : > { %851 = vsyncadd (!%p695_p13), %s592_s10, 4294967264  ;;  %s25_s8 = sadd.s32 1, %s882_s8   ;;  %s1176_s26 = smov %s858_s27 }
 0x272   : > { %p22_p1 = scmp.ge.s32.totalorder %s25_s8, 6   ;;  %s1177_s27 = smov %s862_s0 }
 0x273   : > { %s1178_s0 = smov %s995_s17  ;;  %s1179_s28 = smov %s874_s30 }
 0x274   : > { %s1180_s29 = smov %s878_s7  ;;  %s1181_s30 = smov %s1184_s11 }
 0x275   : > { %s1182_s7 = smov %s1188_s12  ;;  %24 = sbr.rel (!%p22_p1) target bundleno = 20 (0x14), region = 83 }
 0x27c   :  { %597 = vsyncpa [#allocation6], 1 }
 0x27d   :  { %599 = vsyncpa [#allocation6 + $0x1], 1 }

</bundles_post_ra>
